<compile_context>
chip_gen: v7x
topology: tpu7x:2x2x1
jax: 0.10.0
libtpu: 0.0.40
codegen_flags: <defaults>
</compile_context>

<pallas_src>
import jax
import jax.numpy as jnp
from jax import lax
from jax.experimental import pallas as pl
from jax.experimental.pallas import tpu as pltpu


def _round_up(x, m):
    return -(-x // m) * m


def _matmul_bias_relu_kernel(x_ref, w_ref, bias_ref, o_ref):
    """One (batch, row-tile) grid step: single MXU matmul + bias + ReLU.

    x_ref:    (1, TILE_HO, Wo_p, K)   tap-stacked activations (bf16), K=KH*KW*Cin
    w_ref:    (K, Cout_p)             BN-scale-folded weight slab (bf16)
    bias_ref: (1, Cout_p)             folded bias (f32)
    o_ref:    (1, TILE_HO, Wo_p, Cout_p)  bf16 output tile
    """
    _, th, wo, cout_p = o_ref.shape
    k_tot = x_ref.shape[3]
    # Wo_p is a multiple of 16 -> this sublane collapse is a layout no-op.
    lhs = x_ref[...].reshape(th * wo, k_tot)
    acc = jnp.dot(lhs, w_ref[...], preferred_element_type=jnp.float32)
    y = jnp.maximum(acc + bias_ref[0], 0.0)
    # Cout_p is a multiple of 128 -> lane-dense, unmasked bf16 store.
    o_ref[...] = y.reshape(1, th, wo, cout_p).astype(o_ref.dtype)


def conv_block_forward(x_nchw, w_oihw, conv_bias, gamma, beta,
                       running_mean, running_var, *, stride, padding,
                       eps=1e-5, compute_dtype=jnp.bfloat16):
    """Equivalent of F.relu(BatchNorm2d(Conv2d(x))) in eval mode (NCHW in/out)."""
    n, cin, h, w = x_nchw.shape
    cout, _, kh, kw = w_oihw.shape
    if conv_bias is None:                     # Conv2d(bias=False) support
        conv_bias = jnp.zeros((cout,), jnp.float32)

    # ---- fold BatchNorm (running stats) + conv bias into (weights, bias) ----
    inv_std = 1.0 / jnp.sqrt(running_var.astype(jnp.float32) + eps)
    scale = gamma.astype(jnp.float32) * inv_std                         # (Cout,)
    bias_eff = (conv_bias.astype(jnp.float32)
                - running_mean.astype(jnp.float32)) * scale \
        + beta.astype(jnp.float32)                                      # (Cout,)
    w_eff = w_oihw.astype(jnp.float32) * scale[:, None, None, None]     # OIHW

    # ---- output geometry / tiling -------------------------------------------
    ho = (h + 2 * padding - kh) // stride + 1
    wo = (w + 2 * padding - kw) // stride + 1
    cout_p = _round_up(cout, 128)        # lane-dense output + full MXU N dim
    wo_p = _round_up(wo, 16)             # bf16 sublane tile friendly
    k_tot = kh * kw * cin                # matmul contraction depth

    # M = tile_ho * wo_p per matmul; target ~256 rows but keep >=2 row tiles
    # per batch element so the pipeline (and v7x's 2 TCs) have enough steps.
    tile_ho = max(1, min(ho, max(1, 256 // wo_p)))
    while tile_ho > 1 and -(-ho // tile_ho) < 2:
        tile_ho //= 2
    ho_p = _round_up(ho, tile_ho)

    # Conv halo padding plus extra bottom/right zeros so the padded output
    # grid (ho_p, wo_p) is fully covered; extra outputs are sliced off below.
    hp_needed = (ho_p - 1) * stride + kh
    wp_needed = (wo_p - 1) * stride + kw
    pad_h_hi = max(0, hp_needed - h - padding)
    pad_w_hi = max(0, wp_needed - w - padding)

    # ---- layout glue (plain JAX): pad in bf16, tap-stack (im2col) -----------
    x_nhwc = jnp.transpose(x_nchw, (0, 2, 3, 1)).astype(compute_dtype)
    x_pad = jnp.pad(x_nhwc,
                    ((0, 0), (padding, pad_h_hi), (padding, pad_w_hi), (0, 0)))

    taps = []
    for kh_i in range(kh):
        for kw_i in range(kw):
            taps.append(x_pad[:, kh_i:kh_i + (ho_p - 1) * stride + 1:stride,
                              kw_i:kw_i + (wo_p - 1) * stride + 1:stride, :])
    x_col = jnp.concatenate(taps, axis=-1)        # (N, Ho_p, Wo_p, KH*KW*Cin)

    w_slab = jnp.transpose(w_eff, (2, 3, 1, 0)).reshape(k_tot, cout)
    w_slab = jnp.pad(w_slab, ((0, 0), (0, cout_p - cout))).astype(compute_dtype)
    bias2d = jnp.pad(bias_eff, (0, cout_p - cout)).reshape(1, cout_p)

    # ---- VMEM budget / cost estimate ----------------------------------------
    blk_in = tile_ho * wo_p * k_tot * 2
    blk_out = tile_ho * wo_p * cout_p * 2
    w_bytes = k_tot * cout_p * 2 + cout_p * 4
    vmem_limit = int(min(64 * 1024 * 1024,
                         max(8 * 1024 * 1024,
                             4 * (blk_in + blk_out) + 2 * w_bytes + (1 << 20))))
    cost = pl.CostEstimate(
        flops=2 * n * ho_p * wo_p * cout_p * k_tot,
        transcendentals=0,
        bytes_accessed=(n * ho_p * wo_p * k_tot * 2
                        + k_tot * cout_p * 2 + cout_p * 4
                        + n * ho_p * wo_p * cout_p * 2))

    # ---- Pallas matmul + bias + ReLU hot path --------------------------------
    out_nhwc = pl.pallas_call(
        _matmul_bias_relu_kernel,
        out_shape=jax.ShapeDtypeStruct((n, ho_p, wo_p, cout_p), compute_dtype),
        grid_spec=pltpu.PrefetchScalarGridSpec(
            num_scalar_prefetch=0,
            grid=(n, ho_p // tile_ho),
            in_specs=[
                pl.BlockSpec((1, tile_ho, wo_p, k_tot),
                             lambda b, r: (b, r, 0, 0)),
                pl.BlockSpec((k_tot, cout_p), lambda b, r: (0, 0)),
                pl.BlockSpec((1, cout_p), lambda b, r: (0, 0)),
            ],
            out_specs=pl.BlockSpec((1, tile_ho, wo_p, cout_p),
                                   lambda b, r: (b, r, 0, 0)),
        ),
        compiler_params=pltpu.CompilerParams(
            dimension_semantics=("parallel", "parallel"),
            vmem_limit_bytes=vmem_limit),
        cost_estimate=cost,
    )(x_col, w_slab, bias2d)

    # strip Cout/spatial padding, back to PyTorch NCHW convention, f32 out
    out = out_nhwc[:, :ho, :wo, :cout]
    return jnp.transpose(out, (0, 3, 1, 2)).astype(x_nchw.dtype)


def _reference_f32(x, w, b, gamma, beta, mean, var, *, stride, padding,
                   eps=1e-5):
    """Full-precision PyTorch-equivalent reference (no bf16 rounding)."""
    out = lax.conv_general_dilated(
        x.astype(jnp.float32), w.astype(jnp.float32),
        window_strides=(stride, stride),
        padding=((padding, padding), (padding, padding)),
        dimension_numbers=("NCHW", "OIHW", "NCHW"))
    out = out + b.reshape(1, -1, 1, 1)
    inv_std = 1.0 / jnp.sqrt(var + eps)
    out = (out - mean.reshape(1, -1, 1, 1)) * (gamma * inv_std).reshape(
        1, -1, 1, 1) + beta.reshape(1, -1, 1, 1)
    return jnp.maximum(out, 0.0)


def _reference_matched(x, w, b, gamma, beta, mean, var, *, stride, padding,
                       eps=1e-5):
    """Reference mirroring the kernel's bf16 operand + output rounding and BN
    fold, computed through an independent code path (lax.conv)."""
    inv_std = 1.0 / jnp.sqrt(var.astype(jnp.float32) + eps)
    scale = gamma.astype(jnp.float32) * inv_std
    w_eff = w.astype(jnp.float32) * scale[:, None, None, None]
    bias_eff = (b.astype(jnp.float32) - mean.astype(jnp.float32)) * scale \
        + beta.astype(jnp.float32)
    xr = x.astype(jnp.bfloat16).astype(jnp.float32)
    wr = w_eff.astype(jnp.bfloat16).astype(jnp.float32)
    out = lax.conv_general_dilated(
        xr, wr, window_strides=(stride, stride),
        padding=((padding, padding), (padding, padding)),
        dimension_numbers=("NCHW", "OIHW", "NCHW"))
    out = jnp.maximum(out + bias_eff.reshape(1, -1, 1, 1), 0.0)
    return out.astype(jnp.bfloat16).astype(jnp.float32)   # mirror bf16 store


if __name__ == "__main__":
    # ConvBlock(in_channels=4, out_channels=8, kernel_size=3, stride=1, padding=1)
    N, CIN, H, W = 2, 4, 16, 16
    COUT, K, STRIDE, PAD = 8, 3, 1, 1

    key = jax.random.PRNGKey(0)
    k1, k2, k3, k4, k5, k6, k7 = jax.random.split(key, 7)

    x = jax.random.normal(k1, (N, CIN, H, W), dtype=jnp.float32)
    conv_w = jax.random.normal(k2, (COUT, CIN, K, K), dtype=jnp.float32) * 0.1
    conv_b = jax.random.normal(k3, (COUT,), dtype=jnp.float32) * 0.1
    gamma = 1.0 + 0.1 * jax.random.normal(k4, (COUT,), dtype=jnp.float32)
    beta = 0.1 * jax.random.normal(k5, (COUT,), dtype=jnp.float32)
    running_mean = 0.1 * jax.random.normal(k6, (COUT,), dtype=jnp.float32)
    running_var = jnp.abs(1.0 + 0.1 * jax.random.normal(k7, (COUT,),
                                                        dtype=jnp.float32))

    out = conv_block_forward(x, conv_w, conv_b, gamma, beta,
                             running_mean, running_var,
                             stride=STRIDE, padding=PAD)
    out = jax.block_until_ready(out)
    assert out.shape == (N, COUT, H, W)

    # Tight check vs. a matched-precision (bf16 operand + output rounded) ref.
    ref_m = _reference_matched(x, conv_w, conv_b, gamma, beta,
                               running_mean, running_var,
                               stride=STRIDE, padding=PAD)
    err_m = float(jnp.max(jnp.abs(out - ref_m)))
    assert jnp.allclose(out, ref_m, atol=2e-2, rtol=2e-2), err_m

    # Loose sanity check vs. the full-f32 PyTorch-style reference
    # (difference is only the bf16 operand/output rounding).
    ref_f = _reference_f32(x, conv_w, conv_b, gamma, beta,
                           running_mean, running_var,
                           stride=STRIDE, padding=PAD)
    err_f = float(jnp.max(jnp.abs(out - ref_f)))
    assert jnp.allclose(out, ref_f, atol=5e-2, rtol=5e-2), err_f

    print("KERNEL_OK")
</pallas_src>

<mosaic_0001>
module attributes {stable_mosaic.version = 11 : i64} {
  func.func @_matmul_bias_relu_kernel(%arg0: i32, %arg1: i32, %arg2: memref<1x8x16x36xbf16, #tpu.memory_space<vmem>>, %arg3: memref<36x128xbf16, #tpu.memory_space<vmem>>, %arg4: memref<1x128xf32, #tpu.memory_space<vmem>>, %arg5: memref<1x8x16x128xbf16, #tpu.memory_space<vmem>>) attributes {dimension_semantics = [#tpu.dimension_semantics<parallel>, #tpu.dimension_semantics<parallel>], iteration_bounds = array<i64: 2, 2>, scalar_prefetch = 0 : i64, scratch_operands = 0 : i64, tpu.core_type = #tpu.core_type<tc>, window_params = [{transform_indices = @transform_0, window_bounds = array<i64: 1, 8, 16, 36>}, {pipeline_mode = #tpu.pipeline_mode<synchronous>, transform_indices = @transform_1, window_bounds = array<i64: 36, 128>}, {pipeline_mode = #tpu.pipeline_mode<synchronous>, transform_indices = @transform_2, window_bounds = array<i64: 1, 128>}, {transform_indices = @transform_3, window_bounds = array<i64: 1, 8, 16, 128>}]} {
    %c0 = arith.constant 0 : index
    %c0_0 = arith.constant 0 : index
    %c0_1 = arith.constant 0 : index
    %c0_2 = arith.constant 0 : index
    %0 = vector.load %arg2[%c0, %c0_0, %c0_1, %c0_2] : memref<1x8x16x36xbf16, #tpu.memory_space<vmem>>, vector<1x8x16x36xbf16>
    %1 = vector.shape_cast %0 : vector<1x8x16x36xbf16> to vector<128x36xbf16>
    %c0_3 = arith.constant 0 : index
    %c0_4 = arith.constant 0 : index
    %2 = vector.load %arg3[%c0_3, %c0_4] : memref<36x128xbf16, #tpu.memory_space<vmem>>, vector<36x128xbf16>
    %cst = arith.constant dense<0.000000e+00> : vector<128x128xf32>
    %3 = tpu.matmul %1, %2, %cst {dimension_numbers = #tpu.dot_dimension_numbers<[1], [0], [0], [1], [0, 0, 1, 1], [], []>} : vector<128x36xbf16>, vector<36x128xbf16>, vector<128x128xf32> -> vector<128x128xf32>
    %c0_5 = arith.constant 0 : index
    %c0_6 = arith.constant 0 : index
    %4 = vector.load %arg4[%c0_5, %c0_6] : memref<1x128xf32, #tpu.memory_space<vmem>>, vector<1x128xf32>
    %5 = vector.shape_cast %4 : vector<1x128xf32> to vector<128xf32>
    %6 = vector.shape_cast %5 : vector<128xf32> to vector<1x128xf32>
    %7 = vector.broadcast %6 : vector<1x128xf32> to vector<128x128xf32>
    %8 = arith.addf %3, %7 : vector<128x128xf32>
    %cst_7 = arith.constant 0.000000e+00 : f32
    %9 = vector.broadcast %cst_7 : f32 to vector<128x128xf32>
    %10 = arith.maximumf %8, %9 : vector<128x128xf32>
    %11 = vector.shape_cast %10 : vector<128x128xf32> to vector<1x8x16x128xf32>
    %12 = arith.truncf %11 : vector<1x8x16x128xf32> to vector<1x8x16x128xbf16>
    %c0_8 = arith.constant 0 : index
    %c0_9 = arith.constant 0 : index
    %c0_10 = arith.constant 0 : index
    %c0_11 = arith.constant 0 : index
    %13 = vector.load %arg5[%c0_8, %c0_9, %c0_10, %c0_11] : memref<1x8x16x128xbf16, #tpu.memory_space<vmem>>, vector<1x8x16x128xbf16>
    tpu.vector_store %arg5[%c0_8, %c0_9, %c0_10, %c0_11], %12 {strides = array<i32>} : memref<1x8x16x128xbf16, #tpu.memory_space<vmem>>, vector<1x8x16x128xbf16>,
    return
  }
  func.func @transform_0(%arg0: i32, %arg1: i32) -> (i32, i32, i32, i32) {
    %c0_i32 = arith.constant 0 : i32
    %c0_i32_0 = arith.constant 0 : i32
    %c0_i32_1 = arith.constant 0 : i32
    return %arg0, %arg1, %c0_i32, %c0_i32_0 : i32, i32, i32, i32
  }
  func.func @transform_1(%arg0: i32, %arg1: i32) -> (i32, i32) {
    %c0_i32 = arith.constant 0 : i32
    %c0_i32_0 = arith.constant 0 : i32
    %c0_i32_1 = arith.constant 0 : i32
    return %c0_i32, %c0_i32_0 : i32, i32
  }
  func.func @transform_2(%arg0: i32, %arg1: i32) -> (i32, i32) {
    %c0_i32 = arith.constant 0 : i32
    %c0_i32_0 = arith.constant 0 : i32
    %c0_i32_1 = arith.constant 0 : i32
    return %c0_i32, %c0_i32_0 : i32, i32
  }
  func.func @transform_3(%arg0: i32, %arg1: i32) -> (i32, i32, i32, i32) {
    %c0_i32 = arith.constant 0 : i32
    %c0_i32_0 = arith.constant 0 : i32
    %c0_i32_1 = arith.constant 0 : i32
    return %arg0, %arg1, %c0_i32, %c0_i32_0 : i32, i32, i32, i32
  }
}

</mosaic_0001>

<bundles_post_ra>
// kernel: tpu_custom_call.1
= control target key start
LH: loop header
LB: loop body
LE: loop exit
PB: predicated region body
PF: predicated region fallthrough
CT: control target
= control target key end

     0   :  { %s1389_s0 = inlined_call_operand.hbm [shape: bf16[2,16,16,36], index: 0, kind: input, shape index: {}]   ;;  %s1390_s1 = inlined_call_operand.hbm [shape: bf16[36,128], index: 1, kind: input, shape index: {}]   ;;  %s1391_s2 = inlined_call_operand.vmem [shape: f32[1,128], index: 2, kind: input, shape index: {}]   ;;  %s1392_s3 = inlined_call_operand.hbm [shape: bf16[2,16,16,128], index: 3, kind: output, shape index: {}]  }
   0x1   :  { %1403 = sst [smem:[#allocation15_spill]] %s1390_s1 }
   0x2   :  { %8 = vsyncpa [#allocation3], 0 }
   0x3   :  { %10 = vsyncpa [#allocation3 + $0x1], 0 }
   0x4   :  { %11 = vsyncpa [#allocation6], 0 }
   0x5   :  { %12 = vsyncpa [#allocation4], 0 }
   0x6   :  { %14 = vsyncpa [#allocation4 + $0x1], 0  ;;  %s1104_s12 = smov 0   ;;  %s1106_s13 = smov 0  }
   0x7   :  { %s1108_s14 = smov 0   ;;  %s1110_s15 = smov 0  }
   0x8   :  { %s1112_s16 = smov 0   ;;  %s1114_s17 = smov 0  }
   0x9   :  { %s1116_s18 = smov 0   ;;  %s1118_s19 = smov 0  }
   0xa LB: > { %1404 = sst [smem:[#allocation11_spill]] %s1067_s17  ;;  %s648_s20 = sadd.s32 4294967295, %s1075_s19   ;;  %s1075_s19 = sphi %s1118_s19, %s20_s19   ;;  %s1071_s18 = sphi %s1116_s18, %s1433_s18   ;;  %s1067_s17 = sphi %s1114_s17, %s1427_s17   ;;  %s1063_s16 = sphi %s1112_s16, %s1432_s16   ;;  %s1059_s15 = sphi %s1110_s15, %s1426_s15   ;;  %s1055_s14 = sphi %s1108_s14, %s1431_s14   ;;  %s1051_s13 = sphi %s1106_s13, %s1430_s13   ;;  %s1047_s12 = sphi %s1104_s12, %s1429_s12  }
   0xb   : > { %s649_s21 = sadd.s32 4294967294, %s1075_s19   ;;  %p54_p0 = scmp.ne.s32.totalorder %s1051_s13, %s1047_s12 }
   0xc   : > { %p1148_p1 = scmp.eq.s32.totalorder %s648_s20, 0  ;;  %p1152_p2 = scmp.eq.s32.totalorder %s648_s20, 3 }
   0xd   : > { %p128_p3 = scmp.eq.s32.totalorder %s649_s21, 3  ;;  %p650_p5 = scmp.ge.s32.totalorder %s1075_s19, 1 }
   0xe   : > { %s1405_s22 = scalar_select %p1148_p1, 1, 0 }
   0xf   : > { %s1406_s23 = scalar_select %p1152_p2, 1, 0 }
  0x10   : > { %p1158_p4 = por %p1148_p1, %p54_p0  ;;  %p1163_p6 = por %p128_p3, %p54_p0 }
  0x11   : > { %p135_p7 = scmp.lt.s32.totalorder %s1075_s19, 5  ;;  %s1077_s27 = smov [#allocation5]  }
  0x12   : > { %s1407_s24 = scalar_select %p1158_p4, 1, 0 }
  0x13   : > { %s1408_s25 = scalar_select %p1163_p6, 1, 0 }
  0x14   : > { %p1168_p8 = pnand %p650_p5, %p135_p7  ;;  %s147_s28 = sshll.u32 %s1077_s27, 4  ;;  %s148_s28 = int_to_ptr.vmem [resolvable:$true] %s147_s28 }
  0x15   : > { %1409 = sst [smem:[#allocation12_spill]] %s1408_s25  ;;  %s1412_s1 = sld [smem:[#allocation15_spill]] }
  0x16   : > { %s1410_s26 = scalar_select %p1168_p8, 1, 0 }
  0x17   : > { %p819_p9 = pneg %p1168_p8 }
  0x19   : > { %p1176_p10 = pnand %p819_p9, %p1148_p1 }
  0x1b   : > { %s915_s5 = scalar_lea.hbm %s1412_s1, 320  ;;  %p917_p12 = pneg %p1176_p10 }
  0x1c   : > { %p916_p11 = scmp.ne.s32.totalorder %s1412_s1, %s915_s5  ;;  %p922_p3 = scmp.lt.u32.totalorder %s915_s5, %s1412_s1 }
  0x1e   : > { %p918_p13 = pnand %p917_p12, %p916_p11 }
  0x20   : > { %p919_p0 = pneg %p918_p13 }
  0x22   : > { %p924_p5 = pnand %p922_p3, %p919_p0 }
  0x24   : > { %927 = shalt.err (!%p924_p5)
}
  0x25   : > { %s928_s10 = scalar_lea.vmem %s148_s28, 320  ;;  %p936_p1 = scmp.lt.s32.totalorder %s148_s28, %s148_s28 }
  0x26   : > { %p929_p7 = scmp.ne.s32.totalorder %s148_s28, %s928_s10  ;;  %p937_p4 = scmp.lt.s32.totalorder %s928_s10, %s928_s10 }
  0x28   : > { %p931_p9 = pnand %p929_p7, %p917_p12  ;;  %p938_p8 = por %p937_p4, %p936_p1 }
  0x2a   : > { %p932_p6 = pneg %p931_p9 }
  0x2c   : > { %p939_p2 = pnand %p938_p8, %p932_p6 }
  0x2e   : > { %942 = shalt.err (!%p939_p2)
}
  0x2f   : > { %s1397_s11 = smov 64   ;;  %s1398_s20 = smov 4  }
  0x30   : > { %822 = dma.hbm_to_vmem [thread:$0]  (!%p1176_p10), %s1412_s1, 320, %s148_s28, [#allocation6], %s1397_s11, %s1397_s11, %s1398_s20  }
  0x31   : > { %s29_s30 = sadd.s32 1, %s1067_s17  ;;  %s32_s4 = sadd.s32 1, %s1071_s18 }
  0x32   : > { %p30_p1 = scmp.ge.s32.totalorder %s29_s30, 2  ;;  %s41_s5 = sadd.s32 1, %s1055_s14 }
  0x33   : > { %p48_p2 = scmp.ne.s32.totalorder %s1055_s14, %s1051_s13  ;;  %p49_p4 = scmp.eq.s32.totalorder %s1075_s19, 0 }
  0x34   : > { %s1435_s30 = smov (%p30_p1, %s29_s30), 0  ;;  %s1437_s4 = smov (!%p30_p1, %s32_s4), %s1071_s18 }
  0x35   : > { %1413 = sst [smem:[#allocation13_spill]] %s1435_s30  ;;  %s37_s29 = ssub.s32 %s1067_s17, %s1435_s30 }
  0x36   : > { %p34_p6 = scmp.ge.s32.totalorder %s1437_s4, 2  ;;  %p1414_p8 = scmp.ne.s32.totalorder %s1406_s23, 0 }
  0x37   : > { %p1216_p10 = por %p49_p4, %p48_p2  ;;  %p832_p12 = scmp.lt.s32.totalorder %s1075_s19, 4 }
  0x38   : > { %p1212_p11 = por %p1414_p8, %p48_p2  ;;  %s1439_s4 = smov (%p34_p6, %s1437_s4), 0 }
  0x39   : > { %1417 = sst [smem:[#allocation14_spill]] %s1439_s4  ;;  %s164_s7 = sand.u32 1, %s1055_s14  }
  0x3a   : > { %s705_s8 = sshll.u32 %s1067_s17, 4  ;;  %s36_s9 = ssub.s32 %s1071_s18, %s1439_s4 }
  0x3b   : > { %s38_s10 = sor.u32 %s37_s29, %s36_s9  ;;  %s653_s21 = sshll.u32 %s164_s7, 6 }
  0x3c   : > { %p39_p13 = scmp.eq.s32.totalorder %s38_s10, 0  ;;  %s656_s23 = sshll.u32 %s1071_s18, 5 }
  0x3d   : > { %s168_s27 = scalar_lea.vmem [#allocation2], %s653_s21  ;;  %s175_s1 = sadd.s32 %s705_s8, %s656_s23 }
  0x3e   : > { %s178_s11 = sshll.u32 %s168_s27, 4  ;;  %s657_s30 = sshll.u32 %s175_s1, 6  ;;  %s1231_s11 = int_to_ptr.vmem [resolvable:$true] %s178_s11 }
  0x3f   : > { %s1229_s20 = scalar_select %p39_p13, %s1055_s14, %s41_s5  }
  0x40   : > { %p1237_p0 = pnand %p832_p12, %p1216_p10  ;;  %s1244_s29 = scalar_lea.hbm %s1389_s0, %s657_s30 }
  0x41   : > { %s1246_s5 = scalar_lea.sflag [#allocation3], %s164_s7  ;;  %s943_s1 = scalar_lea.hbm %s1244_s29, 1024 }
  0x42   : > { %p944_p3 = scmp.ne.s32.totalorder %s1244_s29, %s943_s1  ;;  %p945_p5 = pneg %p1237_p0 }
  0x43   : > { %s948_s4 = scalar_lea.hbm %s1389_s0, 4096  ;;  %p949_p1 = scmp.lt.u32.totalorder %s1244_s29, %s1389_s0 }
  0x44   : > { %p946_p7 = pnand %p945_p5, %p944_p3  ;;  %p950_p2 = scmp.lt.u32.totalorder %s948_s4, %s943_s1 }
  0x45   : > { %p952_p6 = scmp.lt.u32.totalorder %s943_s1, %s1244_s29 }
  0x46   : > { %p947_p9 = pneg %p946_p7  ;;  %p951_p4 = por %p950_p2, %p949_p1 }
  0x48   : > { %p953_p8 = por %p952_p6, %p951_p4 }
  0x4a   : > { %p954_p10 = pnand %p953_p8, %p947_p9 }
  0x4c   : > { %957 = shalt.err (!%p954_p10)
}
  0x4d   : > { %s958_s7 = scalar_lea.vmem %s1231_s11, 1024  ;;  %s1080_s9 = smov [#allocation2]  }
  0x4e   : > { %p959_p12 = scmp.ne.s32.totalorder %s1231_s11, %s958_s7  ;;  %s963_s10 = sshll.u32 %s1080_s9, 4  ;;  %s964_s10 = int_to_ptr.vmem [resolvable:$false] %s963_s10 }
  0x4f   : > { %s965_s21 = scalar_lea.vmem %s964_s10, 2048  ;;  %p966_p7 = scmp.lt.s32.totalorder %s1231_s11, %s964_s10 }
  0x50   : > { %p961_p13 = pnand %p959_p12, %p945_p5  ;;  %p967_p1 = scmp.lt.s32.totalorder %s965_s21, %s958_s7 }
  0x52   : > { %p962_p3 = pneg %p961_p13  ;;  %p968_p2 = por %p967_p1, %p966_p7 }
  0x54   : > { %p969_p4 = pnand %p968_p2, %p962_p3 }
  0x56   : > { %972 = shalt.err (!%p969_p4)
}
  0x57   : > { %s1419_s23 = smov 4   ;;  %s1420_s27 = smov 64  }
  0x58   : > { %826 = dma.hbm_to_vmem [thread:$0]  (!%p1237_p0), %s1244_s29, 1024, %s1231_s11, %s1246_s5, %s1420_s27, %s1420_s27, %s1419_s23  }
  0x59   : > { %p1421_p5 = scmp.ne.s32.totalorder %s1410_s26, 0 }
  0x5a   : > { %s1280_s1 = sand.u32 (!%p1421_p5), 1, %s1051_s13   ;;  %p1422_p9 = scmp.ne.s32.totalorder (!%p1421_p5), %s1407_s24, 0 }
  0x5b   : > { %190 = sbr.rel (%p1421_p5) target bundleno = 359 (0x167), region = 32  ;;  %s659_s28 = sshll.u32 (!%p1421_p5), %s1280_s1, 6 }
  0x5c   : > { %s193_s17 = scalar_lea.sflag (!%p1421_p5), [#allocation3], %s1280_s1  ;;  %s1286_s25 = scalar_lea.vmem (!%p1421_p5), [#allocation2], %s659_s28 }
  0x62   : > { %1034 = dma.done.wait (%p1422_p9), %s193_s17, 1024  }
  0x63   : > { %1036 = vsyncadd (%p1422_p9), %s193_s17, 4294966272  ;;  %p1423_p0 = scmp.ne.s32.totalorder %s1405_s22, 0 }
  0x65   : > { %1038 = dma.done.wait (%p1423_p0), [#allocation6], 320  }
  0x66   : > { %1040 = vsyncadd (%p1423_p0), [#allocation6], 4294966976  ;;  %v904_v0 = vld [vmem:[#allocation5] sm:$0xff]   ;;  %v905_v1 = vld [vmem:[#allocation5 + $0x8] sm:$0xff]   ;;  %vm309_vm0 = vcmask 293888   ;;  %vm334_vm1 = vcmask 1041408  }
  0x67   : > { %781 = vmatprep.subr.bf16.mxu0 %v904_v0  ;;  %803 = vmatprep.subr.bf16.mxu1 %v904_v0  ;;  %v906_v2 = vld [vmem:[#allocation5 + $0x10] ss:$0 sps:$4 sm:$0x33]   ;;  %v907_v3 = vld [vmem:[%s1286_s25] sm:$0xff]   ;;  %v909_v6 = vld [vmem:[%s1286_s25 + $0x8] sm:$0xff]   ;;  %s722_s26 = sshll.u32 %s1059_s15, 4 }
  0x68   : > { %782 = vmatpush3.bf16.msra.mxu0 %v904_v0  ;;  %806 = vmatpush3.bf16.msra.mxu1 %v904_v0  ;;  %v908_v4 = vld [vmem:[%s1286_s25 + $0x20] sm:$0xff]   ;;  %v336_v5 = vsel %vm334_vm1, %v906_v2, 0  ;;  %v910_v7 = vld [vmem:[%s1286_s25 + $0x28] sm:$0xff]   ;;  %v911_v8 = vld [vmem:[%s1286_s25 + $0x10] sm:$0xff]   ;;  %s701_s11 = sshll.u32 %s1063_s16, 5  ;;  %s1319_s29 = scalar_lea.vmem [#allocation7], %s659_s28 }
  0x69   : > { %783 = vmatprep.subr.bf16.mxu0 %v905_v1  ;;  %804 = vmatprep.subr.bf16.mxu1 %v905_v1  ;;  %v912_v9 = vld [vmem:[%s1286_s25 + $0x30] sm:$0xff]   ;;  %v913_v10 = vld [vmem:[%s1286_s25 + $0x18] sm:$0xff]   ;;  %v662_v12 = vld [vmem:[%s1391_s2] ss:$0 sm:$0xff]  ;;  %s545_s15 = sadd.s32 %s722_s26, %s701_s11  ;;  %s548_s16 = sshll.u32 %s1319_s29, 4  ;;  %s1326_s16 = int_to_ptr.vmem [resolvable:$true] %s548_s16 }
  0x6a   : > { %787 = vmatprep.mubr.msk.bf16.mxu0 %vm309_vm0, %v907_v3  ;;  %795 = vmatprep.mubr.msk.bf16.mxu1 %vm309_vm0, %v908_v4  ;;  %v914_v11 = vld [vmem:[%s1286_s25 + $0x38] sm:$0xff]   ;;  %s702_s5 = sshll.u32 %s545_s15, 6  ;;  %s532_s7 = scalar_lea.sflag [#allocation4], %s1280_s1 }
  0x6b   : > { %s1331_s8 = scalar_lea.hbm %s1392_s3, %s702_s5  ;;  %s973_s9 = scalar_lea.vmem %s1326_s16, 1024 }
  0x6c   : > { %784 = vmatpush3.bf16.msra.mxu0 %v905_v1  ;;  %807 = vmatpush3.bf16.msra.mxu1 %v905_v1  ;;  %p974_p6 = scmp.ne.s32.totalorder %s1326_s16, %s973_s9  ;;  %s1081_s10 = smov [#allocation7]  }
  0x6d   : > { %809 = vmatprep.subr.msk.bf16.mxu0 %vm334_vm1, %v906_v2  ;;  %810 = vmatprep.subr.msk.bf16.mxu1 %vm334_vm1, %v906_v2  ;;  %s977_s21 = sshll.u32 %s1081_s10, 4  ;;  %s978_s21 = int_to_ptr.vmem [resolvable:$false] %s977_s21 }
  0x6e   : > { %p975_p8 = pnand %p974_p6, %p1212_p11  ;;  %s979_s23 = scalar_lea.vmem %s978_s21, 2048 }
  0x6f   : > { %p980_p12 = scmp.lt.s32.totalorder %s1326_s16, %s978_s21  ;;  %p981_p13 = scmp.lt.s32.totalorder %s979_s23, %s973_s9 }
  0x70   : > { %786 = vmatpush3.bf16.msra.mxu0 %v336_v5  ;;  %808 = vmatpush3.bf16.msra.mxu1 %v336_v5  ;;  %p976_p10 = pneg %p975_p8 }
  0x71   : > { %p982_p3 = por %p981_p13, %p980_p12 }
  0x73   : > { %788 = vmatmul.mubr.msk.bf16.vlgmr.msra.gmra.mrb[0].mxu0 %vm309_vm0, %v909_v6  ;;  %796 = vmatmul.mubr.msk.bf16.vlgmr.msra.gmra.mrb[0].mxu1 %vm309_vm0, %v910_v7  ;;  %p983_p7 = pnand %p982_p3, %p976_p10 }
  0x74   : > { %791 = vmatprep.mubr.msk.bf16.mxu0 %vm309_vm0, %v911_v8  ;;  %799 = vmatprep.mubr.msk.bf16.mxu1 %vm309_vm0, %v912_v9 }
  0x7b   : > { %792 = vmatmul.mubr.msk.bf16.gmra.mrb[4].mxu0 %vm309_vm0, %v913_v10  ;;  %800 = vmatmul.mubr.msk.bf16.gmra.mrb[4].mxu1 %vm309_vm0, %v914_v11 }
 0x146   : > { %v789_v13 = vpop.f32.mrb[0].mxu0  ;;  %v797_v14 = vpop.f32.mrb[0].mxu1 }
 0x147   : > { %v381_v15 = vadd.f32 %v789_v13, %v662_v12  ;;  %v413_v16 = vadd.f32 %v797_v14, %v662_v12  ;;  %v372_v17 = vpop.f32.mrb[1].mxu0  ;;  %v404_v18 = vpop.f32.mrb[1].mxu1 }
 0x148   : > { %v373_v19 = vadd.f32 %v662_v12, %v372_v17  ;;  %v405_v20 = vadd.f32 %v662_v12, %v404_v18  ;;  %v790_v21 = vpop.f32.mrb[2].mxu0  ;;  %v798_v22 = vpop.f32.mrb[2].mxu1 }
 0x149   : > { %v384_v23 = vadd.f32 %v790_v21, %v662_v12  ;;  %v416_v24 = vadd.f32 %v798_v22, %v662_v12  ;;  %v375_v25 = vpop.f32.mrb[3].mxu0  ;;  %v407_v26 = vpop.f32.mrb[3].mxu1  ;;  %v437_v29 = vmax.f32 %v381_v15, 0.0  ;;  %v445_v30 = vmax.f32 %v413_v16, 0.0 }
 0x14a   : > { %v376_v27 = vadd.f32 %v662_v12, %v375_v25  ;;  %v408_v28 = vadd.f32 %v662_v12, %v407_v26  ;;  %v435_v33 = vmax.f32 %v373_v19, 0.0  ;;  %v443_v34 = vmax.f32 %v405_v20, 0.0 }
 0x14b   : > { %v438_v31 = vmax.f32 %v384_v23, 0.0  ;;  %v446_v32 = vmax.f32 %v416_v24, 0.0 }
 0x14c   : > { %v436_v35 = vmax.f32 %v376_v27, 0.0  ;;  %v444_v36 = vmax.f32 %v408_v28, 0.0 }
 0x14d   : > { %v731_v37 = vpack.c.bf16 %v438_v31, %v437_v29  ;;  %v751_v38 = vpack.c.bf16 %v446_v32, %v445_v30 }
 0x14e   : > { %v726_v39 = vpack.c.bf16 %v436_v35, %v435_v33  ;;  %v746_v40 = vpack.c.bf16 %v444_v36, %v443_v34  ;;  %v793_v41 = vpop.f32.mrb[4].mxu0  ;;  %v801_v42 = vpop.f32.mrb[4].mxu1 }
 0x14f   : > { %763 = vst [vmem:[%s1319_s29 + $0x8] sm:$0xff] %v731_v37   ;;  %767 = vst [vmem:[%s1319_s29 + $0x28] sm:$0xff] %v751_v38   ;;  %v397_v43 = vadd.f32 %v793_v41, %v662_v12  ;;  %v429_v44 = vadd.f32 %v801_v42, %v662_v12  ;;  %v388_v45 = vpop.f32.mrb[5].mxu0  ;;  %v420_v46 = vpop.f32.mrb[5].mxu1 }
 0x150   : > { %727 = vst [vmem:[%s1319_s29] sm:$0xff] %v726_v39   ;;  %766 = vst [vmem:[%s1319_s29 + $0x20] sm:$0xff] %v746_v40   ;;  %v389_v47 = vadd.f32 %v662_v12, %v388_v45  ;;  %v421_v48 = vadd.f32 %v662_v12, %v420_v46  ;;  %v794_v49 = vpop.f32.mrb[6].mxu0  ;;  %v802_v50 = vpop.f32.mrb[6].mxu1 }
 0x151   : > { %v400_v51 = vadd.f32 %v794_v49, %v662_v12  ;;  %v432_v52 = vadd.f32 %v802_v50, %v662_v12  ;;  %v391_v53 = vpop.f32.mrb[7].mxu0  ;;  %v423_v54 = vpop.f32.mrb[7].mxu1  ;;  %v441_v57 = vmax.f32 %v397_v43, 0.0  ;;  %v449_v58 = vmax.f32 %v429_v44, 0.0 }
 0x152   : > { %v392_v55 = vadd.f32 %v662_v12, %v391_v53  ;;  %v424_v56 = vadd.f32 %v662_v12, %v423_v54  ;;  %v439_v61 = vmax.f32 %v389_v47, 0.0  ;;  %v447_v62 = vmax.f32 %v421_v48, 0.0 }
 0x153   : > { %v442_v59 = vmax.f32 %v400_v51, 0.0  ;;  %v450_v60 = vmax.f32 %v432_v52, 0.0 }
 0x154   : > { %v440_v63 = vmax.f32 %v392_v55, 0.0  ;;  %v448_v0 = vmax.f32 %v424_v56, 0.0 }
 0x155   : > { %v741_v1 = vpack.c.bf16 %v442_v59, %v441_v57  ;;  %v761_v2 = vpack.c.bf16 %v450_v60, %v449_v58 }
 0x156   : > { %v736_v3 = vpack.c.bf16 %v440_v63, %v439_v61  ;;  %v756_v4 = vpack.c.bf16 %v448_v0, %v447_v62 }
 0x157   : > { %765 = vst [vmem:[%s1319_s29 + $0x18] sm:$0xff] %v741_v1   ;;  %769 = vst [vmem:[%s1319_s29 + $0x38] sm:$0xff] %v761_v2  }
 0x158   : > { %764 = vst [vmem:[%s1319_s29 + $0x10] sm:$0xff] %v736_v3   ;;  %768 = vst [vmem:[%s1319_s29 + $0x30] sm:$0xff] %v756_v4  }
 0x159   : > { %986 = shalt.err (!%p983_p7)
}
 0x15a   : > { %s987_s27 = scalar_lea.hbm %s1331_s8, 1024  ;;  %s991_s25 = scalar_lea.hbm %s1392_s3, 4096 }
 0x15b   : > { %p988_p1 = scmp.ne.s32.totalorder %s1331_s8, %s987_s27  ;;  %p992_p5 = scmp.lt.u32.totalorder %s1331_s8, %s1392_s3 }
 0x15c   : > { %p993_p9 = scmp.lt.u32.totalorder %s991_s25, %s987_s27  ;;  %p995_p6 = scmp.lt.u32.totalorder %s987_s27, %s1331_s8 }
 0x15d   : > { %p989_p2 = pnand %p988_p1, %p1212_p11 }
 0x15e   : > { %p994_p0 = por %p993_p9, %p992_p5 }
 0x15f   : > { %p990_p4 = pneg %p989_p2 }
 0x160   : > { %p996_p8 = por %p995_p6, %p994_p0 }
 0x162   : > { %p997_p10 = pnand %p996_p8, %p990_p4 }
 0x164   : > { %1000 = shalt.err (!%p997_p10)
}
 0x165   : > { %s1082_s26 = smov 64   ;;  %s1083_s11 = smov 4  }
 0x166   : > { %817 = dma.vmem_to_hbm [thread:$0]  (%p1212_p11), %s1326_s16, 1024, %s1331_s8, %s532_s7, %s1082_s26, %s1082_s26, %s1083_s11  }
 0x167 PF: > { %s1424_s29 = sld [smem:[#allocation12_spill]]  ;;  %p834_p12 = scmp.ge.s32.totalorder %s1075_s19, 2 }
 0x168   : > { %s563_s15 = sand.u32 1, %s1047_s12  }
 0x169   : > { %s564_s5 = scalar_lea.sflag [#allocation4], %s563_s15 }
 0x16d   : > { %p1425_p13 = scmp.ne.s32.totalorder %s1424_s29, 0 }
 0x16f   : > { %p828_p3 = pnand %p834_p12, %p1425_p13 }
 0x171   : > { %1042 = dma.done.wait (!%p828_p3), %s564_s5, 1024  }
 0x172   : > { %1044 = vsyncadd (!%p828_p3), %s564_s5, 4294966272  ;;  %s20_s19 = sadd.s32 1, %s1075_s19   ;;  %s1426_s15 = sld [smem:[#allocation11_spill]] }
 0x173   : > { %p17_p7 = scmp.ge.s32.totalorder %s20_s19, 6   ;;  %s1427_s17 = sld [smem:[#allocation13_spill]] }
 0x174   : > { %s1428_s6 = sld [smem:[#allocation14_spill]]  ;;  %s1429_s12 = smov %s1051_s13 }
 0x175   : > { %s1430_s13 = smov %s1055_s14  ;;  %s1431_s14 = smov %s1229_s20 }
 0x176   : > { %s1432_s16 = smov %s1071_s18  ;;  %19 = sbr.rel (!%p17_p7) target bundleno = 10 (0xa), region = 81 }
 0x17a   : > { %s1433_s18 = smov %s1428_s6 }
 0x17d   :  { %569 = vsyncpa [#allocation3], 1 }
 0x17e   :  { %571 = vsyncpa [#allocation3 + $0x1], 1 }
 0x17f   :  { %572 = vsyncpa [#allocation6], 1 }
 0x180   :  { %573 = vsyncpa [#allocation4], 1 }
 0x181   :  { %575 = vsyncpa [#allocation4 + $0x1], 1 }

</bundles_post_ra>
